<compile_context>
chip_gen: v7x
topology: tpu7x:2x2x1
jax: 0.10.0
libtpu: 0.0.40
codegen_flags: <defaults>
</compile_context>

<pallas_src>
import functools

import jax
import jax.numpy as jnp
import numpy as np
from jax.experimental import pallas as pl
from jax.experimental.pallas import tpu as pltpu

# (name, vocab_size, emb_dim) -- exactly the nn.Embedding tables in __init__
EMB_SPECS = [
    ("item_embedding",        981, 8),
    ("first_industry_name",    15, 4),
    ("second_industry_name",   58, 8),
    ("seller_embedding",      685, 8),
    ("category_level_1_name",  47, 8),
    ("category_level_2_name", 146, 8),
    ("detail_industry_id",     59, 8),
    ("industry_id",            16, 4),
    ("big_industry_id",        16, 4),
    ("age_segment_ser",         7, 4),
    ("user_active_degree",      9, 4),
    ("device_brand",           65, 8),
    ("country",                66, 8),
    ("province",              228, 8),
    ("city",                  520, 8),
]
NUM_FIELDS = len(EMB_SPECS)                       # 15
EMB_TOTAL = sum(d for _, _, d in EMB_SPECS)       # 100
FEAT_DIM = 105                                    # Linear(105, 1)
NUM_DIM = FEAT_DIM - EMB_TOTAL                    # 5 numerical features
FEAT_ROWS = NUM_FIELDS + NUM_DIM                  # 20 feature-major slab rows
V_TOTAL = sum(v for _, v, _ in EMB_SPECS)         # 2918 folded-table entries
V_PAD = ((V_TOTAL + 127) // 128) * 128            # 2944 (lane-friendly pad)


def init_params(seed: int = 42):
    """Deterministic synthetic parameters matching the PyTorch module shapes."""
    key = jax.random.PRNGKey(seed)
    params = {}
    for name, vocab, dim in EMB_SPECS:
        key, sub = jax.random.split(key)
        # nn.Embedding default init: N(0, 1)
        params[name] = jax.random.normal(sub, (vocab, dim), dtype=jnp.float32)
    key, kw, kb = jax.random.split(key, 3)
    bound = 1.0 / np.sqrt(FEAT_DIM)
    # nn.Linear default init: U(-1/sqrt(in), 1/sqrt(in))
    params["linear_w"] = jax.random.uniform(
        kw, (1, FEAT_DIM), minval=-bound, maxval=bound, dtype=jnp.float32)
    params["linear_b"] = jax.random.uniform(
        kb, (1,), minval=-bound, maxval=bound, dtype=jnp.float32)
    return params


def fold_params(params):
    """Fold the Linear weights (and bias) into the embedding tables, offline.

    logit[b] = sum_f (table_f @ w_f)[x[b, f]] + numerical[b] . w_num + bias,
    with the bias folded into field 0's entries (exactly one row of table 0 is
    selected per example).
    """
    w = params["linear_w"][0]                     # (105,)
    b = params["linear_b"][0]                     # scalar
    folded, offsets = [], []
    off_feat, off_vocab = 0, 0
    for i, (name, vocab, dim) in enumerate(EMB_SPECS):
        w_slice = w[off_feat:off_feat + dim]      # (dim,)
        f = params[name] @ w_slice                # (vocab,)  table_f @ w_f
        if i == 0:
            f = f + b                             # bias folded into field 0
        folded.append(f)
        offsets.append(off_vocab)
        off_feat += dim
        off_vocab += vocab
    table = jnp.concatenate(folded, axis=0).astype(jnp.float32)   # (2918,)
    table_padded = jnp.zeros((1, V_PAD), jnp.float32).at[0, :V_TOTAL].set(table)
    return {
        "folded_table": table,                    # (V_TOTAL,) f32
        "folded_table_padded": table_padded,      # (1, V_PAD)  f32, VMEM-resident in kernel
        "offsets": jnp.asarray(offsets, dtype=jnp.int32),   # (15,)
        "w_num": w[off_feat:].reshape(1, NUM_DIM).astype(jnp.float32),
    }


def _dim_semantics():
    """Batch grid axis: CORE_PARALLEL on v7x (engage both TensorCores),
    plain PARALLEL on single-TC v5e/v6e."""
    kind = ""
    try:
        kind = jax.devices()[0].device_kind.lower()
    except Exception:
        pass
    if "v7" in kind:
        return (pltpu.CORE_PARALLEL,)
    return (pltpu.PARALLEL,)


def _tile_geometry(batch, tile_b):
    """tile_b must be a multiple of 128 (batch rides the 128-lane axis)."""
    b128 = ((batch + 127) // 128) * 128
    tile_b = max(128, (min(int(tile_b), b128) // 128) * 128)
    nt = (batch + tile_b - 1) // tile_b
    return tile_b, nt, nt * tile_b


_COMMON_COMPILER_KW = dict(vmem_limit_bytes=32 * 1024 * 1024)


# ---------------------------------------------------------------------------
# Kernel bodies
# ---------------------------------------------------------------------------

def _sum_rows_kernel(slab_ref, out_ref):
    # slab: (20, tile_b) f32 -- rows 0..14 folded per-field contributions (bias
    #       already folded into field 0), rows 15..19 numerics pre-scaled by w_num.
    # out : (1, tile_b) f32 lane-dense logits (unmasked stores).
    out_ref[...] = jnp.sum(slab_ref[...], axis=0, keepdims=True)


def _fused_gather_kernel(table_ref, ids_ref, num_ref, out_ref):
    # table: (1, V_PAD)  f32 folded table, VMEM-resident (constant block index).
    # ids  : (15, tile_b) int32 global ids into the concatenated folded table.
    # num  : (5, tile_b)  f32 numerics pre-scaled by w_num.
    # out  : (1, tile_b)  f32 lane-dense logits.
    vals = jnp.take(table_ref[0, :], ids_ref[...], axis=0)     # (15, tile_b)
    out_ref[...] = (jnp.sum(vals, axis=0, keepdims=True)
                    + jnp.sum(num_ref[...], axis=0, keepdims=True))


# ---------------------------------------------------------------------------
# Forward wrappers
# ---------------------------------------------------------------------------

@functools.partial(jax.jit, static_argnames=("tile_b",))
def _cvr_forward_slab(fold, x, numerical_feature, *, tile_b=32768):
    """XLA does the 15 folded-scalar gathers; the kernel consumes one lane-dense
    feature-major slab and reduces it (fallback path)."""
    B = x.shape[0]
    tile_b, nt, Bp = _tile_geometry(B, tile_b)
    x = x.astype(jnp.int32)
    nf = numerical_feature.astype(jnp.float32)
    if Bp != B:
        # id 0 is always a valid row; padded columns are dropped after the kernel.
        x = jnp.pad(x, ((0, Bp - B), (0, 0)))
        nf = jnp.pad(nf, ((0, Bp - B), (0, 0)))

    # Slab is born feature-major (fields on sublanes, batch on lanes).
    # NOTE: jnp.take uses XLA's default index clamping for out-of-range ids.
    gid = fold["offsets"][:, None] + x.T                       # (15, Bp)
    vals = jnp.take(fold["folded_table"], gid, axis=0)         # (15, Bp) f32
    num_scaled = nf.T * fold["w_num"].reshape(NUM_DIM, 1)      # (5, Bp)
    slab = jnp.concatenate([vals, num_scaled], axis=0)         # (20, Bp)

    out = pl.pallas_call(
        _sum_rows_kernel,
        out_shape=jax.ShapeDtypeStruct((1, Bp), jnp.float32),
        grid=(nt,),
        in_specs=[pl.BlockSpec((FEAT_ROWS, tile_b), lambda i: (0, i))],
        out_specs=pl.BlockSpec((1, tile_b), lambda i: (0, i)),
        compiler_params=pltpu.CompilerParams(
            dimension_semantics=_dim_semantics(), **_COMMON_COMPILER_KW),
    )(slab)
    return out[0, :B, None]                                    # (B, 1)


@functools.partial(jax.jit, static_argnames=("tile_b",))
def _cvr_forward_fused(fold, x, numerical_feature, *, tile_b=32768):
    """Gather happens inside the kernel: the folded table stays VMEM-resident and
    the kernel is the only consumer of the ids (no (Bp,15) f32 HBM round-trip)."""
    B = x.shape[0]
    tile_b, nt, Bp = _tile_geometry(B, tile_b)
    x = x.astype(jnp.int32)
    nf = numerical_feature.astype(jnp.float32)
    if Bp != B:
        x = jnp.pad(x, ((0, Bp - B), (0, 0)))
        nf = jnp.pad(nf, ((0, Bp - B), (0, 0)))

    # Explicit clamp: in-kernel VMEM indexing has no bounds check (review note).
    ids_t = jnp.clip(fold["offsets"][:, None] + x.T, 0, V_TOTAL - 1)   # (15, Bp)
    num_scaled = nf.T * fold["w_num"].reshape(NUM_DIM, 1)              # (5, Bp)

    out = pl.pallas_call(
        _fused_gather_kernel,
        out_shape=jax.ShapeDtypeStruct((1, Bp), jnp.float32),
        grid=(nt,),
        in_specs=[
            pl.BlockSpec((1, V_PAD), lambda i: (0, 0)),        # table: VMEM-resident
            pl.BlockSpec((NUM_FIELDS, tile_b), lambda i: (0, i)),
            pl.BlockSpec((NUM_DIM, tile_b), lambda i: (0, i)),
        ],
        out_specs=pl.BlockSpec((1, tile_b), lambda i: (0, i)),
        compiler_params=pltpu.CompilerParams(
            dimension_semantics=_dim_semantics(), **_COMMON_COMPILER_KW),
    )(fold["folded_table_padded"], ids_t, num_scaled)
    return out[0, :B, None]                                    # (B, 1)


_FUSED_GATHER_OK = None


def _fused_gather_ok(fold):
    """One-time probe: does the in-kernel jnp.take gather lower AND compute
    correctly on this jax/Mosaic version?  If not, use the slab kernel."""
    global _FUSED_GATHER_OK
    if _FUSED_GATHER_OK is None:
        try:
            nb = 128
            ids = np.stack([(np.arange(nb) * 37) % vocab
                            for _, vocab, _ in EMB_SPECS], axis=1).astype(np.int32)
            nf = np.linspace(-1.0, 1.0, nb * NUM_DIM,
                             dtype=np.float32).reshape(nb, NUM_DIM)
            got = np.asarray(jax.block_until_ready(
                _cvr_forward_fused(fold, jnp.asarray(ids), jnp.asarray(nf),
                                   tile_b=128)))
            gid = ids + np.asarray(fold["offsets"])[None, :]
            want = (np.asarray(fold["folded_table"])[gid].sum(axis=1, keepdims=True)
                    + nf @ np.asarray(fold["w_num"]).T)
            _FUSED_GATHER_OK = bool(np.allclose(got, want, rtol=1e-4, atol=1e-4))
        except Exception:
            _FUSED_GATHER_OK = False
    return _FUSED_GATHER_OK


def cvr_forward(fold, x, numerical_feature, *, tile_b=32768):
    """Matches CVR_Model.forward (15 lookups -> concat -> Linear(105, 1)) via the
    folded-weight formulation.  Picks the fused in-kernel-gather kernel when the
    gather lowers on this backend, else the XLA-gather + slab-sum kernel."""
    if _fused_gather_ok(fold):
        return _cvr_forward_fused(fold, x, numerical_feature, tile_b=tile_b)
    return _cvr_forward_slab(fold, x, numerical_feature, tile_b=tile_b)


if __name__ == "__main__":
    params = init_params(seed=42)
    fold = fold_params(params)

    # Small demo batch: B=300 with tile_b=128 exercises a 3-step grid and the
    # zero-padded partial-tile path.
    B = 300
    key = jax.random.PRNGKey(0)
    k_ids, k_num = jax.random.split(key)
    id_keys = jax.random.split(k_ids, NUM_FIELDS)
    cols = [jax.random.randint(kk, (B,), 0, vocab, dtype=jnp.int32)
            for (_, vocab, _), kk in zip(EMB_SPECS, id_keys)]
    x = jnp.stack(cols, axis=1)                                  # (B, 15) int32
    numerical_feature = jax.random.normal(k_num, (B, NUM_DIM), dtype=jnp.float32)

    logit = cvr_forward(fold, x, numerical_feature, tile_b=128)
    logit = jax.block_until_ready(logit)

    # Pure-JAX reference of the ORIGINAL (unfolded) computation:
    # 15 embedding gathers -> concat -> Linear(105, 1).
    embs = [jnp.take(params[n], x[:, i], axis=0)
            for i, (n, _, _) in enumerate(EMB_SPECS)]
    feat_ref = jnp.concatenate(embs + [numerical_feature], axis=1)
    ref = feat_ref @ params["linear_w"].T + params["linear_b"]
    np.testing.assert_allclose(np.asarray(logit), np.asarray(ref),
                               rtol=1e-4, atol=1e-4)

    assert logit.shape == (B, 1)
    print("KERNEL_OK")
</pallas_src>

<mosaic_0001>
module attributes {stable_mosaic.version = 11 : i64} {
  func.func private @main(%arg0: i32) attributes {dimension_semantics = [#tpu.dimension_semantics<core_parallel>], iteration_bounds = array<i64: 2>, tpu.core_type = #tpu.core_type<sc_scalar_subcore>, window_params = []} {
    return
  }
}

module attributes {stable_mosaic.version = 11 : i64} {
  func.func private @main(%arg0: i32) attributes {dimension_semantics = [#tpu.dimension_semantics<core_parallel>], iteration_bounds = array<i64: 2>, tpu.core_type = #tpu.core_type<sc_scalar_subcore>, window_params = []} {
    return
  }
}

module attributes {stable_mosaic.version = 11 : i64} {
  func.func @_sum_rows_kernel(%arg0: i32, %arg1: memref<20x128xf32, #tpu.memory_space<vmem>>, %arg2: memref<1x128xf32, #tpu.memory_space<vmem>>) attributes {dimension_semantics = [#tpu.dimension_semantics<parallel>], iteration_bounds = array<i64: 3>, scalar_prefetch = 0 : i64, scratch_operands = 0 : i64, tpu.core_type = #tpu.core_type<tc>, window_params = [{transform_indices = @transform_0, window_bounds = array<i64: 20, 128>}, {transform_indices = @transform_1, window_bounds = array<i64: 1, 128>}]} {
    %c0 = arith.constant 0 : index
    %c0_0 = arith.constant 0 : index
    %0 = vector.load %arg1[%c0, %c0_0] : memref<20x128xf32, #tpu.memory_space<vmem>>, vector<20x128xf32>
    %cst = arith.constant dense<0.000000e+00> : vector<128xf32>
    %1 = vector.multi_reduction <add>, %0, %cst [0] : vector<20x128xf32> to vector<128xf32>
    %2 = vector.shape_cast %1 : vector<128xf32> to vector<1x128xf32>
    %c0_1 = arith.constant 0 : index
    %c0_2 = arith.constant 0 : index
    %3 = vector.load %arg2[%c0_1, %c0_2] : memref<1x128xf32, #tpu.memory_space<vmem>>, vector<1x128xf32>
    tpu.vector_store %arg2[%c0_1, %c0_2], %2 {strides = array<i32>} : memref<1x128xf32, #tpu.memory_space<vmem>>, vector<1x128xf32>,
    return
  }
  func.func @transform_0(%arg0: i32) -> (i32, i32) {
    %c0_i32 = arith.constant 0 : i32
    %c0_i32_0 = arith.constant 0 : i32
    return %c0_i32, %arg0 : i32, i32
  }
  func.func @transform_1(%arg0: i32) -> (i32, i32) {
    %c0_i32 = arith.constant 0 : i32
    %c0_i32_0 = arith.constant 0 : i32
    return %c0_i32, %arg0 : i32, i32
  }
}

</mosaic_0001>

<bundles_post_ra>
// kernel: _cvr_forward_slab.1
= control target key start
LH: loop header
LB: loop body
LE: loop exit
PB: predicated region body
PF: predicated region fallthrough
CT: control target
= control target key end

     0   :  { %s290_s6 = smov 0   ;;  %s292_s7 = smov 0   ;;  %s344_s0 = inlined_call_operand.vmem [shape: f32[20,384], index: 0, kind: input, shape index: {}]   ;;  %s345_s1 = inlined_call_operand.vmem [shape: f32[1,384], index: 1, kind: output, shape index: {}]  }
   0x1   :  { %s294_s8 = smov 0  }
   0x2 LB: > { %s222_s9 = sadd.s32 4294967295, %s278_s8   ;;  %s307_s10 = sadd.s32 1, %s278_s8   ;;  %s278_s8 = sphi %s294_s8, %s348_s8   ;;  %s274_s7 = sphi %s292_s7, %s347_s7   ;;  %s270_s6 = sphi %s290_s6, %s346_s6  }
   0x3   : > { %s15_s11 = ssub.s32 %s278_s8, %s307_s10  ;;  %s18_s12 = sadd.s32 1, %s274_s7 }
   0x4   : > { %p16_p0 = scmp.eq.s32.totalorder %s15_s11, 0  ;;  %p25_p1 = scmp.ne.s32.totalorder %s274_s7, %s270_s6 }
   0x5   : > { %p26_p2 = scmp.eq.s32.totalorder %s278_s8, 0  ;;  %p225_p4 = scmp.ge.s32.totalorder %s278_s8, 3 }
   0x6   : > { %s316_s13 = scalar_select %p16_p0, %s274_s7, %s18_s12  }
   0x7   : > { %p27_p3 = por %p26_p2, %p25_p1  ;;  %77 = sbr.rel (%p225_p4) target bundleno = 21 (0x15), region = 16 }
   0xe   : > { %80 = sbr.rel (!%p27_p3) target bundleno = 21 (0x15), region = 20  ;;  %s82_s14 = sand.u32 (%p27_p3), 1, %s274_s7  }
   0xf   : > { %s226_s15 = sshll.u32 (%p27_p3), %s278_s8, 3  ;;  %s230_s16 = smul.u32 (%p27_p3), 24, %s82_s14 }
  0x10   : > { %s86_s19 = scalar_lea.vmem (%p27_p3), %s344_s0, %s226_s15 }
  0x11   : > { %v118_v0 = vld [vmem:[%s86_s19] sm:$0xff] (%p27_p3)  ;;  %v120_v1 = vld [vmem:[%s86_s19 + $0x18] sm:$0xff] (%p27_p3)  ;;  %v122_v2 = vld [vmem:[%s86_s19 + $0x30] sm:$0xff] (%p27_p3)  ;;  %s84_s20 = scalar_lea.vmem (%p27_p3), [#allocation2], %s230_s16 }
  0x12   : > { %119 = vst [vmem:[%s84_s20] sm:$0xff] (%p27_p3), %v118_v0  ;;  %121 = vst [vmem:[%s84_s20 + $0x8] sm:$0xff] (%p27_p3), %v120_v1 }
  0x13   : > { %123 = vst [vmem:[%s84_s20 + $0x10] sm:$0xff] (%p27_p3), %v122_v2 }
  0x15 PF: > { %p227_p5 = scmp.ge.s32.totalorder %s278_s8, 1  ;;  %p128_p6 = scmp.lt.s32.totalorder %s278_s8, 4 }
  0x17   : > { %p129_p7 = pnand %p227_p5, %p128_p6 }
  0x18   : > { %s135_s21 = sand.u32 (!%p129_p7), 1, %s270_s6   ;;  %vm159_vm0 = vcmask (!%p129_p7), 1043456   ;;  %p152_p8 = scmp.lt.s32.totalorder (!%p129_p7), %s222_s9, 2 }
  0x19   : > { %132 = sbr.rel (%p129_p7) target bundleno = 47 (0x2f), region = 58 }
  0x1a   : > { %s231_s22 = smul.u32 (!%p129_p7), 24, %s135_s21 }
  0x1c   : > { %s137_s23 = scalar_lea.vmem (!%p129_p7), [#allocation2], %s231_s22 }
  0x1d   : > { %v155_v3 = vld [vmem:[%s137_s23] sm:$0xff] (!%p129_p7)  ;;  %v156_v4 = vld [vmem:[%s137_s23 + $0x8] sm:$0xff] (!%p129_p7)  ;;  %v157_v5 = vld [vmem:[%s137_s23 + $0x10] sm:$0xf] (!%p129_p7) }
  0x1e   : > { %v158_v6 = vadd.f32 (!%p129_p7), %v156_v4, %v155_v3  ;;  %v160_v7 = vsel (!%p129_p7), %vm159_vm0, %v157_v5, 0.0 }
  0x20   : > { %v161_v8 = vadd.f32 %v160_v7, %v158_v6  ;;  %s350_s9 = smov (!%p152_p8, %s222_s9), 2 }
  0x21   : > { %s154_s26 = scalar_lea.vmem %s345_s1, %s350_s9 }
  0x22   : > { %v162_v9 = vrot.slane %v161_v8, 4 }
  0x24   : > { %v163_v10 = vadd.f32 %v162_v9, %v161_v8 }
  0x26   : > { %v164_v11 = vrot.slane %v163_v10, 2 }
  0x28   : > { %v165_v12 = vadd.f32 %v164_v11, %v163_v10 }
  0x2a   : > { %v166_v13 = vrot.slane %v165_v12, 1 }
  0x2c   : > { %v167_v14 = vadd.f32 %v166_v13, %v165_v12 }
  0x2e   : > { %168 = vst [vmem:[%s154_s26] sm:$0x1] %v167_v14 }
  0x2f PF: > { %p8_p9 = scmp.ge.s32.totalorder %s307_s10, 5   ;;  %s346_s6 = smov %s274_s7 }
  0x30   : > { %s347_s7 = smov %s316_s13  ;;  %s348_s8 = smov %s307_s10 }
  0x31   :  { %10 = sbr.rel (!%p8_p9) target bundleno = 2 (0x2), region = 97 }

</bundles_post_ra>
